<compile_context>
chip_gen: v7x
topology: tpu7x:2x2x1
jax: 0.10.0
libtpu: 0.0.40
codegen_flags: <defaults>
</compile_context>

<pallas_src>
import functools

import jax
import jax.numpy as jnp
from jax.experimental import pallas as pl
from jax.experimental.pallas import tpu as pltpu


def _gelu(x):
    # matches torch.nn.GELU() default (exact, erf-based)
    return jax.nn.gelu(x, approximate=False)


def _layernorm(x, gamma, beta, eps=1e-5):
    # one-pass mean / mean-of-squares (halves the cross-lane reductions)
    mu = jnp.mean(x, axis=-1, keepdims=True)
    ms = jnp.mean(x * x, axis=-1, keepdims=True)
    var = ms - mu * mu
    return (x - mu) * jax.lax.rsqrt(var + eps) * gamma + beta


# ---------------------------------------------------------------------------
# Kernel 1: K/V projection of LayerNorm(x), head-major output layout
#   grid = (B, token_tiles, heads)
# ---------------------------------------------------------------------------
def kv_proj_kernel(x_ref, g_ref, b_ref, wk_ref, wv_ref, k_ref, v_ref):
    xn = _layernorm(x_ref[0].astype(jnp.float32), g_ref[...], b_ref[...])
    k_ref[0, 0] = jnp.dot(xn, wk_ref[0],
                          preferred_element_type=jnp.float32).astype(k_ref.dtype)
    v_ref[0, 0] = jnp.dot(xn, wv_ref[0],
                          preferred_element_type=jnp.float32).astype(v_ref.dtype)


# ---------------------------------------------------------------------------
# Kernel 2: fused flash-attention + out-proj + residual + LN + MLP + residual
#   grid = (B, q_tiles, heads, k_tiles)
# ---------------------------------------------------------------------------
def attn_mlp_kernel(x_ref, k_ref, v_ref, gq_ref, bq_ref, wq_ref, wo_ref, bo_ref,
                    gm_ref, bm_ref, w1_ref, b1_ref, w2_ref, b2_ref, o_ref,
                    q_s, m_s, l_s, acc_s, proj_s, *, scale):
    h = pl.program_id(2)
    ki = pl.program_id(3)
    n_heads = pl.num_programs(2)
    n_kv = pl.num_programs(3)

    @pl.when((h == 0) & (ki == 0))
    def _zero_proj():
        proj_s[...] = jnp.zeros_like(proj_s)

    @pl.when(ki == 0)
    def _start_head():
        # LayerNorm of the query tile; scale folded into q.
        xn = _layernorm(x_ref[0].astype(jnp.float32), gq_ref[...], bq_ref[...])
        q_s[...] = jnp.dot(xn, wq_ref[0],
                           preferred_element_type=jnp.float32) * scale
        m_s[...] = jnp.full_like(m_s, -jnp.inf)
        l_s[...] = jnp.zeros_like(l_s)
        acc_s[...] = jnp.zeros_like(acc_s)

    k = k_ref[0, 0].astype(jnp.float32)                       # (tk, dh)
    v = v_ref[0, 0].astype(jnp.float32)                       # (tk, dh)
    # q @ k^T via dot_general (contract the dim_head axis of both operands)
    s = jax.lax.dot_general(q_s[...], k, (((1,), (1,)), ((), ())),
                            preferred_element_type=jnp.float32)   # (tq, tk)
    m_new = jnp.maximum(m_s[...], jnp.max(s, axis=-1, keepdims=True))
    alpha = jnp.exp(m_s[...] - m_new)
    p = jnp.exp(s - m_new)
    l_s[...] = alpha * l_s[...] + jnp.sum(p, axis=-1, keepdims=True)
    acc_s[...] = alpha * acc_s[...] + jnp.dot(p, v, preferred_element_type=jnp.float32)
    m_s[...] = m_new

    @pl.when(ki == n_kv - 1)
    def _end_head():
        # finalize this head and fold it straight into the output projection:
        # concat(head_outs) @ Wo == sum_h head_out_h @ Wo[h]
        head_out = acc_s[...] * pl.reciprocal(l_s[...], approx=True)   # (tq, dh)
        proj_s[...] += jnp.dot(head_out, wo_ref[0],
                               preferred_element_type=jnp.float32)     # (tq, C)

    @pl.when((h == n_heads - 1) & (ki == n_kv - 1))
    def _finalize():
        xa = x_ref[0].astype(jnp.float32) + proj_s[...] + bo_ref[...]  # attn residual
        xn2 = _layernorm(xa, gm_ref[...], bm_ref[...])
        hid = _gelu(jnp.dot(xn2, w1_ref[...],
                            preferred_element_type=jnp.float32) + b1_ref[...])
        y = jnp.dot(hid, w2_ref[...],
                    preferred_element_type=jnp.float32) + b2_ref[...]
        o_ref[0] = (xa + y).astype(o_ref.dtype)                        # mlp residual


# ---------------------------------------------------------------------------
# Wrapper: full CrossAttentionLayer forward (self-attention, inference mode)
# ---------------------------------------------------------------------------
def cross_attention_layer(x, params, *, heads, dim_head, tq=64, tk=64):
    B, N, C = x.shape
    assert N % tq == 0 and N % tk == 0
    hidden = params["mlp"]["w1"].shape[1]
    scale = dim_head ** (-0.5)

    gq, bq = params["norm_q"]["gamma"], params["norm_q"]["beta"]
    gm, bm = params["norm_mlp"]["gamma"], params["norm_mlp"]["beta"]
    pa, pm = params["attn"], params["mlp"]

    # Head-major weight layouts (host-side, one-time reshapes)
    wq_h = pa["wq"].reshape(C, heads, dim_head).transpose(1, 0, 2)   # (H, C, dh)
    wk_h = pa["wk"].reshape(C, heads, dim_head).transpose(1, 0, 2)   # (H, C, dh)
    wv_h = pa["wv"].reshape(C, heads, dim_head).transpose(1, 0, 2)   # (H, C, dh)
    wo_h = pa["wo"].reshape(heads, dim_head, C)                      # (H, dh, C)

    nqt, nkt = N // tq, N // tk

    # --- Stage 1: K / V projections (head-major) -------------------------
    k, v = pl.pallas_call(
        kv_proj_kernel,
        out_shape=(jax.ShapeDtypeStruct((B, heads, N, dim_head), x.dtype),
                   jax.ShapeDtypeStruct((B, heads, N, dim_head), x.dtype)),
        grid=(B, nkt, heads),
        in_specs=[
            pl.BlockSpec((1, tk, C), lambda b, t, h: (b, t, 0)),
            pl.BlockSpec((1, C), lambda b, t, h: (0, 0)),
            pl.BlockSpec((1, C), lambda b, t, h: (0, 0)),
            pl.BlockSpec((1, C, dim_head), lambda b, t, h: (h, 0, 0)),
            pl.BlockSpec((1, C, dim_head), lambda b, t, h: (h, 0, 0)),
        ],
        out_specs=(pl.BlockSpec((1, 1, tk, dim_head), lambda b, t, h: (b, h, t, 0)),
                   pl.BlockSpec((1, 1, tk, dim_head), lambda b, t, h: (b, h, t, 0))),
        compiler_params=pltpu.CompilerParams(
            dimension_semantics=("parallel", "parallel", "parallel")),
    )(x, gq, bq, wk_h, wv_h)

    # --- Stage 2: fused attention + MLP ----------------------------------
    kernel = functools.partial(attn_mlp_kernel, scale=scale)
    out = pl.pallas_call(
        kernel,
        out_shape=jax.ShapeDtypeStruct((B, N, C), x.dtype),
        grid=(B, nqt, heads, nkt),
        in_specs=[
            pl.BlockSpec((1, tq, C), lambda b, q, h, kk: (b, q, 0)),          # x
            pl.BlockSpec((1, 1, tk, dim_head), lambda b, q, h, kk: (b, h, kk, 0)),  # K
            pl.BlockSpec((1, 1, tk, dim_head), lambda b, q, h, kk: (b, h, kk, 0)),  # V
            pl.BlockSpec((1, C), lambda b, q, h, kk: (0, 0)),                 # gamma_q
            pl.BlockSpec((1, C), lambda b, q, h, kk: (0, 0)),                 # beta_q
            pl.BlockSpec((1, C, dim_head), lambda b, q, h, kk: (h, 0, 0)),    # Wq[h]
            pl.BlockSpec((1, dim_head, C), lambda b, q, h, kk: (h, 0, 0)),    # Wo[h]
            pl.BlockSpec((1, C), lambda b, q, h, kk: (0, 0)),                 # bo
            pl.BlockSpec((1, C), lambda b, q, h, kk: (0, 0)),                 # gamma_mlp
            pl.BlockSpec((1, C), lambda b, q, h, kk: (0, 0)),                 # beta_mlp
            pl.BlockSpec((C, hidden), lambda b, q, h, kk: (0, 0)),            # W1
            pl.BlockSpec((1, hidden), lambda b, q, h, kk: (0, 0)),            # b1
            pl.BlockSpec((hidden, C), lambda b, q, h, kk: (0, 0)),            # W2
            pl.BlockSpec((1, C), lambda b, q, h, kk: (0, 0)),                 # b2
        ],
        out_specs=pl.BlockSpec((1, tq, C), lambda b, q, h, kk: (b, q, 0)),
        scratch_shapes=[
            pltpu.VMEM((tq, dim_head), jnp.float32),   # q (scaled)
            pltpu.VMEM((tq, 1), jnp.float32),          # m (running max)
            pltpu.VMEM((tq, 1), jnp.float32),          # l (running denom)
            pltpu.VMEM((tq, dim_head), jnp.float32),   # acc (running numerator)
            pltpu.VMEM((tq, C), jnp.float32),          # out-projection accumulator
        ],
        compiler_params=pltpu.CompilerParams(
            dimension_semantics=("parallel", "parallel", "arbitrary", "arbitrary"),
            vmem_limit_bytes=32 * 1024 * 1024),
    )(x, k, v, gq, bq, wq_h, wo_h, pa["bo"], gm, bm,
      pm["w1"], pm["b1"], pm["w2"], pm["b2"])
    return out


# ---------------------------------------------------------------------------
# Pure-JAX reference (same math as the PyTorch module, no Pallas)
# ---------------------------------------------------------------------------
def reference(x, params, *, heads, dim_head):
    B, N, C = x.shape
    gq, bq = params["norm_q"]["gamma"], params["norm_q"]["beta"]
    gm, bm = params["norm_mlp"]["gamma"], params["norm_mlp"]["beta"]
    pa, pm = params["attn"], params["mlp"]
    scale = dim_head ** (-0.5)

    def ln(t, g, b, eps=1e-5):
        mu = jnp.mean(t, -1, keepdims=True)
        var = jnp.mean((t - mu) ** 2, -1, keepdims=True)
        return (t - mu) * jax.lax.rsqrt(var + eps) * g + b

    xn = ln(x, gq, bq)
    q, k, v = xn @ pa["wq"], xn @ pa["wk"], xn @ pa["wv"]
    split = lambda t: t.reshape(B, N, heads, dim_head).transpose(0, 2, 1, 3)
    qh, kh, vh = split(q), split(k), split(v)
    sim = jnp.einsum("bhid,bhjd->bhij", qh, kh) * scale
    attn = jax.nn.softmax(sim, -1)
    o = jnp.einsum("bhij,bhjd->bhid", attn, vh)
    o = o.transpose(0, 2, 1, 3).reshape(B, N, heads * dim_head)
    x1 = x + (o @ pa["wo"] + pa["bo"])
    xn2 = ln(x1, gm, bm)
    return x1 + (_gelu(xn2 @ pm["w1"] + pm["b1"]) @ pm["w2"] + pm["b2"])


def make_params(key, dim, heads, dim_head, mlp_ratio=4.0):
    hidden = int(mlp_ratio * dim)
    hd = heads * dim_head
    ks = jax.random.split(key, 12)
    n = lambda k, s, sc=0.05: (sc * jax.random.normal(k, s)).astype(jnp.float32)
    return {
        "norm_q": {"gamma": 1.0 + n(ks[0], (1, dim)), "beta": n(ks[1], (1, dim))},
        "norm_mlp": {"gamma": 1.0 + n(ks[2], (1, dim)), "beta": n(ks[3], (1, dim))},
        "attn": {"wq": n(ks[4], (dim, hd)), "wk": n(ks[5], (dim, hd)),
                 "wv": n(ks[6], (dim, hd)), "wo": n(ks[7], (hd, dim)),
                 "bo": n(ks[8], (1, dim))},
        "mlp": {"w1": n(ks[9], (dim, hidden)), "b1": n(ks[10], (1, hidden)),
                "w2": n(ks[11], (hidden, dim)), "b2": jnp.zeros((1, dim), jnp.float32)},
    }


if __name__ == "__main__":
    key = jax.random.PRNGKey(0)
    B, N, C = 2, 128, 128          # tokens x query_dim (lane-dense C)
    heads, dim_head = 4, 32        # module defaults -> inner_dim = 128

    kx, kp = jax.random.split(key)
    x = jax.random.normal(kx, (B, N, C), dtype=jnp.float32)
    params = make_params(kp, C, heads, dim_head)

    out = cross_attention_layer(x, params, heads=heads, dim_head=dim_head,
                                tq=64, tk=64)
    out = jax.block_until_ready(out)

    ref = reference(x, params, heads=heads, dim_head=dim_head)
    err = float(jnp.max(jnp.abs(out - ref)))
    assert out.shape == (B, N, C), out.shape
    assert err < 1e-3, f"max abs error {err}"
    print("KERNEL_OK")
</pallas_src>

<mosaic_0001>
module attributes {stable_mosaic.version = 11 : i64} {
  func.func @kv_proj_kernel(%arg0: i32, %arg1: i32, %arg2: i32, %arg3: memref<1x64x128xf32, #tpu.memory_space<vmem>>, %arg4: memref<1x128xf32, #tpu.memory_space<vmem>>, %arg5: memref<1x128xf32, #tpu.memory_space<vmem>>, %arg6: memref<1x128x32xf32, #tpu.memory_space<vmem>>, %arg7: memref<1x128x32xf32, #tpu.memory_space<vmem>>, %arg8: memref<1x1x64x32xf32, #tpu.memory_space<vmem>>, %arg9: memref<1x1x64x32xf32, #tpu.memory_space<vmem>>) attributes {dimension_semantics = [#tpu.dimension_semantics<parallel>, #tpu.dimension_semantics<parallel>, #tpu.dimension_semantics<parallel>], iteration_bounds = array<i64: 2, 2, 4>, scalar_prefetch = 0 : i64, scratch_operands = 0 : i64, tpu.core_type = #tpu.core_type<tc>, window_params = [{transform_indices = @transform_0, window_bounds = array<i64: 1, 64, 128>}, {pipeline_mode = #tpu.pipeline_mode<synchronous>, transform_indices = @transform_1, window_bounds = array<i64: 1, 128>}, {pipeline_mode = #tpu.pipeline_mode<synchronous>, transform_indices = @transform_2, window_bounds = array<i64: 1, 128>}, {transform_indices = @transform_3, window_bounds = array<i64: 1, 128, 32>}, {transform_indices = @transform_4, window_bounds = array<i64: 1, 128, 32>}, {transform_indices = @transform_5, window_bounds = array<i64: 1, 1, 64, 32>}, {transform_indices = @transform_6, window_bounds = array<i64: 1, 1, 64, 32>}]} {
    %c0 = arith.constant 0 : index
    %c0_0 = arith.constant 0 : index
    %c0_1 = arith.constant 0 : index
    %0 = vector.load %arg3[%c0, %c0_0, %c0_1] : memref<1x64x128xf32, #tpu.memory_space<vmem>>, vector<1x64x128xf32>
    %1 = vector.shape_cast %0 : vector<1x64x128xf32> to vector<64x128xf32>
    %c0_2 = arith.constant 0 : index
    %c0_3 = arith.constant 0 : index
    %2 = vector.load %arg4[%c0_2, %c0_3] : memref<1x128xf32, #tpu.memory_space<vmem>>, vector<1x128xf32>
    %c0_4 = arith.constant 0 : index
    %c0_5 = arith.constant 0 : index
    %3 = vector.load %arg5[%c0_4, %c0_5] : memref<1x128xf32, #tpu.memory_space<vmem>>, vector<1x128xf32>
    %cst = arith.constant dense<0.000000e+00> : vector<64xf32>
    %4 = vector.multi_reduction <add>, %1, %cst [1] : vector<64x128xf32> to vector<64xf32>
    %5 = vector.shape_cast %4 : vector<64xf32> to vector<64x1xf32>
    %cst_6 = arith.constant 1.280000e+02 : f32
    %6 = vector.broadcast %cst_6 : f32 to vector<64x1xf32>
    %7 = arith.divf %5, %6 : vector<64x1xf32>
    %8 = arith.mulf %1, %1 : vector<64x128xf32>
    %cst_7 = arith.constant dense<0.000000e+00> : vector<64xf32>
    %9 = vector.multi_reduction <add>, %8, %cst_7 [1] : vector<64x128xf32> to vector<64xf32>
    %10 = vector.shape_cast %9 : vector<64xf32> to vector<64x1xf32>
    %cst_8 = arith.constant 1.280000e+02 : f32
    %11 = vector.broadcast %cst_8 : f32 to vector<64x1xf32>
    %12 = arith.divf %10, %11 : vector<64x1xf32>
    %13 = arith.mulf %7, %7 : vector<64x1xf32>
    %14 = arith.subf %12, %13 : vector<64x1xf32>
    %15 = vector.broadcast %7 : vector<64x1xf32> to vector<64x128xf32>
    %16 = arith.subf %1, %15 : vector<64x128xf32>
    %cst_9 = arith.constant 9.99999974E-6 : f32
    %17 = vector.broadcast %cst_9 : f32 to vector<64x1xf32>
    %18 = arith.addf %14, %17 : vector<64x1xf32>
    %19 = math.rsqrt %18 : vector<64x1xf32>
    %20 = vector.broadcast %19 : vector<64x1xf32> to vector<64x128xf32>
    %21 = arith.mulf %16, %20 : vector<64x128xf32>
    %22 = vector.broadcast %2 : vector<1x128xf32> to vector<64x128xf32>
    %23 = arith.mulf %21, %22 : vector<64x128xf32>
    %24 = vector.broadcast %3 : vector<1x128xf32> to vector<64x128xf32>
    %25 = arith.addf %23, %24 : vector<64x128xf32>
    %c0_10 = arith.constant 0 : index
    %c0_11 = arith.constant 0 : index
    %c0_12 = arith.constant 0 : index
    %26 = vector.load %arg6[%c0_10, %c0_11, %c0_12] : memref<1x128x32xf32, #tpu.memory_space<vmem>>, vector<1x128x32xf32>
    %27 = vector.shape_cast %26 : vector<1x128x32xf32> to vector<128x32xf32>
    %cst_13 = arith.constant dense<0.000000e+00> : vector<64x32xf32>
    %28 = tpu.matmul %25, %27, %cst_13 {dimension_numbers = #tpu.dot_dimension_numbers<[1], [0], [0], [1], [0, 0, 1, 1], [], []>} : vector<64x128xf32>, vector<128x32xf32>, vector<64x32xf32> -> vector<64x32xf32>
    %c0_14 = arith.constant 0 : index
    %c0_15 = arith.constant 0 : index
    %c0_16 = arith.constant 0 : index
    %c0_17 = arith.constant 0 : index
    %29 = vector.load %arg8[%c0_14, %c0_15, %c0_16, %c0_17] : memref<1x1x64x32xf32, #tpu.memory_space<vmem>>, vector<1x1x64x32xf32>
    %30 = vector.shape_cast %29 : vector<1x1x64x32xf32> to vector<64x32xf32>
    %31 = vector.shape_cast %28 : vector<64x32xf32> to vector<1x1x64x32xf32>
    tpu.vector_store %arg8[%c0_14, %c0_15, %c0_16, %c0_17], %31 {strides = array<i32>} : memref<1x1x64x32xf32, #tpu.memory_space<vmem>>, vector<1x1x64x32xf32>,
    %c0_18 = arith.constant 0 : index
    %c0_19 = arith.constant 0 : index
    %c0_20 = arith.constant 0 : index
    %32 = vector.load %arg7[%c0_18, %c0_19, %c0_20] : memref<1x128x32xf32, #tpu.memory_space<vmem>>, vector<1x128x32xf32>
    %33 = vector.shape_cast %32 : vector<1x128x32xf32> to vector<128x32xf32>
    %cst_21 = arith.constant dense<0.000000e+00> : vector<64x32xf32>
    %34 = tpu.matmul %25, %33, %cst_21 {dimension_numbers = #tpu.dot_dimension_numbers<[1], [0], [0], [1], [0, 0, 1, 1], [], []>} : vector<64x128xf32>, vector<128x32xf32>, vector<64x32xf32> -> vector<64x32xf32>
    %c0_22 = arith.constant 0 : index
    %c0_23 = arith.constant 0 : index
    %c0_24 = arith.constant 0 : index
    %c0_25 = arith.constant 0 : index
    %35 = vector.load %arg9[%c0_22, %c0_23, %c0_24, %c0_25] : memref<1x1x64x32xf32, #tpu.memory_space<vmem>>, vector<1x1x64x32xf32>
    %36 = vector.shape_cast %35 : vector<1x1x64x32xf32> to vector<64x32xf32>
    %37 = vector.shape_cast %34 : vector<64x32xf32> to vector<1x1x64x32xf32>
    tpu.vector_store %arg9[%c0_22, %c0_23, %c0_24, %c0_25], %37 {strides = array<i32>} : memref<1x1x64x32xf32, #tpu.memory_space<vmem>>, vector<1x1x64x32xf32>,
    return
  }
  func.func @transform_0(%arg0: i32, %arg1: i32, %arg2: i32) -> (i32, i32, i32) {
    %c0_i32 = arith.constant 0 : i32
    %c0_i32_0 = arith.constant 0 : i32
    return %arg0, %arg1, %c0_i32 : i32, i32, i32
  }
  func.func @transform_1(%arg0: i32, %arg1: i32, %arg2: i32) -> (i32, i32) {
    %c0_i32 = arith.constant 0 : i32
    %c0_i32_0 = arith.constant 0 : i32
    %c0_i32_1 = arith.constant 0 : i32
    return %c0_i32, %c0_i32_0 : i32, i32
  }
  func.func @transform_2(%arg0: i32, %arg1: i32, %arg2: i32) -> (i32, i32) {
    %c0_i32 = arith.constant 0 : i32
    %c0_i32_0 = arith.constant 0 : i32
    %c0_i32_1 = arith.constant 0 : i32
    return %c0_i32, %c0_i32_0 : i32, i32
  }
  func.func @transform_3(%arg0: i32, %arg1: i32, %arg2: i32) -> (i32, i32, i32) {
    %c0_i32 = arith.constant 0 : i32
    %c0_i32_0 = arith.constant 0 : i32
    %c0_i32_1 = arith.constant 0 : i32
    return %arg2, %c0_i32, %c0_i32_0 : i32, i32, i32
  }
  func.func @transform_4(%arg0: i32, %arg1: i32, %arg2: i32) -> (i32, i32, i32) {
    %c0_i32 = arith.constant 0 : i32
    %c0_i32_0 = arith.constant 0 : i32
    %c0_i32_1 = arith.constant 0 : i32
    return %arg2, %c0_i32, %c0_i32_0 : i32, i32, i32
  }
  func.func @transform_5(%arg0: i32, %arg1: i32, %arg2: i32) -> (i32, i32, i32, i32) {
    %c0_i32 = arith.constant 0 : i32
    %c0_i32_0 = arith.constant 0 : i32
    return %arg0, %arg2, %arg1, %c0_i32 : i32, i32, i32, i32
  }
  func.func @transform_6(%arg0: i32, %arg1: i32, %arg2: i32) -> (i32, i32, i32, i32) {
    %c0_i32 = arith.constant 0 : i32
    %c0_i32_0 = arith.constant 0 : i32
    return %arg0, %arg2, %arg1, %c0_i32 : i32, i32, i32, i32
  }
}

</mosaic_0001>

<bundles_post_ra>
// kernel: tpu_custom_call.1
= control target key start
LH: loop header
LB: loop body
LE: loop exit
PB: predicated region body
PF: predicated region fallthrough
CT: control target
= control target key end

     0   :  { %s1375_s21 = smov 0   ;;  %s1377_s22 = smov 0   ;;  %s1645_s0 = inlined_call_operand.vmem [shape: f32[2,128,128], index: 0, kind: input, shape index: {}]   ;;  %s1646_s1 = inlined_call_operand.vmem [shape: f32[1,128], index: 1, kind: input, shape index: {}]   ;;  %s1647_s2 = inlined_call_operand.vmem [shape: f32[1,128], index: 2, kind: input, shape index: {}]   ;;  %s1648_s3 = inlined_call_operand.vmem [shape: f32[4,128,32], index: 3, kind: input, shape index: {}]   ;;  %s1649_s4 = inlined_call_operand.vmem [shape: f32[4,128,32], index: 4, kind: input, shape index: {}]   ;;  %s1650_s5 = inlined_call_operand.vmem [shape: f32[2,4,128,32], index: 5, kind: output, shape index: {0}]   ;;  %s1651_s6 = inlined_call_operand.vmem [shape: f32[2,4,128,32], index: 6, kind: output, shape index: {1}]  }
   0x1   :  { %s1379_s23 = smov 0   ;;  %s1381_s24 = smov 0  }
   0x2   :  { %s1383_s25 = smov 0   ;;  %s1385_s26 = smov 0  }
   0x3   :  { %s1387_s27 = smov 0  }
   0x4 LB: > { %s29_s28 = sadd.s32 1, %s1326_s24  ;;  %s32_s29 = sadd.s32 1, %s1330_s25  ;;  %s1338_s27 = sphi %s1387_s27, %s17_s27   ;;  %s1334_s26 = sphi %s1385_s26, %s1657_s26   ;;  %s1330_s25 = sphi %s1383_s25, %s1656_s25   ;;  %s1326_s24 = sphi %s1381_s24, %s1655_s24   ;;  %s1322_s23 = sphi %s1379_s23, %s1654_s23   ;;  %s1318_s22 = sphi %s1377_s22, %s1653_s22   ;;  %s1314_s21 = sphi %s1375_s21, %s1652_s21  }
   0x5   : > { %p30_p0 = scmp.ge.s32.totalorder %s29_s28, 4  ;;  %p990_p1 = scmp.ge.s32.totalorder %s1338_s27, 1 }
   0x6   : > { %p269_p2 = scmp.lt.s32.totalorder %s1338_s27, 17  ;;  %s36_s30 = sadd.s32 1, %s1334_s26 }
   0x7   : > { %s1659_s28 = smov (%p30_p0, %s29_s28), 0  ;;  %s1661_s29 = smov (!%p30_p0, %s32_s29), %s1330_s25 }
   0x8   : > { %p270_p3 = pnand %p990_p1, %p269_p2  ;;  %p34_p4 = scmp.ge.s32.totalorder %s1661_s29, 2 }
   0x9   : > { %s991_s7 = sshll.u32 (!%p270_p3), %s1318_s22, 3  ;;  %p335_p6 = scmp.lt.s32.totalorder (!%p270_p3), %s1322_s23, 1  ;;  %vm646_vm0 = vcmask (!%p270_p3), 261120  }
   0xa   : > { %s1663_s29 = smov (%p34_p4, %s1661_s29), 0  ;;  %s1665_s30 = smov (!%p34_p4, %s36_s30), %s1334_s26 }
   0xb   : > { %p38_p5 = scmp.ge.s32.totalorder %s1665_s30, 2  ;;  %273 = sbr.rel (%p270_p3) target bundleno = 432 (0x1b0), region = 40 }
   0xc   : > { %p337_p7 = scmp.lt.s32.totalorder (!%p270_p3), %s991_s7, 15  ;;  %p344_p8 = scmp.lt.s32.totalorder (!%p270_p3), %s1314_s21, 3 }
   0xd   : > { %s1667_s30 = smov (%p38_p5, %s1665_s30), 0 }
  0x12   : > { %s1669_s23 = smov (!%p335_p6, %s1322_s23), 1  ;;  %s1671_s7 = smov (!%p337_p7, %s991_s7), 15 }
  0x13   : > { %s992_s8 = sshll.u32 %s1669_s23, 4  ;;  %s1673_s21 = smov (!%p344_p8, %s1314_s21), 3 }
  0x14   : > { %s340_s9 = sadd.s32 %s992_s8, %s1671_s7  ;;  %s1010_s14 = sshll.u32 %s1673_s21, 7 }
  0x15   : > { %s993_s10 = sshll.u32 %s340_s9, 3  ;;  %s1451_s17 = scalar_lea.vmem %s1648_s3, %s1010_s14 }
  0x16   : > { %s1429_s13 = scalar_lea.vmem %s1645_s0, %s993_s10  ;;  %s1456_s20 = scalar_lea.vmem %s1649_s4, %s1010_s14  ;;  %v525_v4 = vld [vmem:[%s1451_s17] sm:$0xff]  ;;  %v526_v5 = vld [vmem:[%s1451_s17 + $0x8] sm:$0xff]  ;;  %v527_v16 = vld [vmem:[%s1451_s17 + $0x10] sm:$0xff] }
  0x17   : > { %v1432_v0 = vld [vmem:[%s1429_s13 + $0x18] sm:$0xff]  ;;  %v1435_v1 = vld [vmem:[%s1429_s13] sm:$0xff]  ;;  %v1445_v3 = vld [vmem:[%s1429_s13 + $0x8] sm:$0xff]  ;;  %v1148_v8 = vpack.c.bf16 %v526_v5, %v525_v4  ;;  %s999_s11 = sshll.u32 %s1673_s21, 4 }
  0x18   : > { %398 = vadd.xlane.f32.xlu1 %v1432_v0  ;;  %392 = vadd.xlane.f32.xlu0 %v1435_v1  ;;  %v417_v2 = vmul.f32 %v1435_v1, %v1435_v1  ;;  %v655_v6 = vld [vmem:[%s1456_s20] sm:$0xff]  ;;  %v418_v7 = vmul.f32 %v1445_v3, %v1445_v3  ;;  %v656_v9 = vld [vmem:[%s1456_s20 + $0x8] sm:$0xff]  ;;  %v1466_v10 = vld [vmem:[%s1429_s13 + $0x10] sm:$0xff]  ;;  %v420_v13 = vmul.f32 %v1432_v0, %v1432_v0  ;;  %s362_s12 = sadd.s32 %s999_s11, %s1671_s7 }
  0x19   : > { %v1180_v11 = vpack.c.bf16 %v656_v9, %v655_v6  ;;  %1149 = vmatprep.subr.bf16.mxu0 %v1148_v8  ;;  %v419_v12 = vmul.f32 %v1466_v10, %v1466_v10  ;;  %v1474_v14 = vld [vmem:[%s1429_s13 + $0x20] sm:$0xff]  ;;  %v1477_v15 = vld [vmem:[%s1429_s13 + $0x28] sm:$0xff]  ;;  %v528_v17 = vld [vmem:[%s1451_s17 + $0x18] sm:$0xff] }
  0x1a   : > { %1151 = vmatpush3.bf16.msra.mxu0 %v1148_v8  ;;  %v657_v18 = vld [vmem:[%s1456_s20 + $0x10] sm:$0xff]  ;;  %v1152_v19 = vpack.c.bf16 %v528_v17, %v527_v16  ;;  %v658_v20 = vld [vmem:[%s1456_s20 + $0x18] sm:$0xff]  ;;  %v421_v21 = vmul.f32 %v1474_v14, %v1474_v14  ;;  %v422_v22 = vmul.f32 %v1477_v15, %v1477_v15  ;;  %v529_v24 = vld [vmem:[%s1451_s17 + $0x20] sm:$0xff] }
  0x1b   : > { %1181 = vmatprep.subr.bf16.mxu1 %v1180_v11  ;;  %v1184_v23 = vpack.c.bf16 %v658_v20, %v657_v18  ;;  %v530_v25 = vld [vmem:[%s1451_s17 + $0x28] sm:$0xff]  ;;  %v659_v26 = vld [vmem:[%s1456_s20 + $0x20] sm:$0xff]  ;;  %v1494_v30 = vld [vmem:[%s1429_s13 + $0x30] sm:$0xff] }
  0x1c   : > { %394 = vadd.xlane.f32.xlu0 %v1445_v3  ;;  %425 = vadd.xlane.f32.xlu1 %v417_v2  ;;  %v1156_v27 = vpack.c.bf16 %v530_v25, %v529_v24  ;;  %v660_v28 = vld [vmem:[%s1456_s20 + $0x28] sm:$0xff]  ;;  %v1497_v31 = vld [vmem:[%s1429_s13 + $0x38] sm:$0xff]  ;;  %v531_v32 = vld [vmem:[%s1451_s17 + $0x30] sm:$0xff]  ;;  %v423_v37 = vmul.f32 %v1494_v30, %v1494_v30  ;;  %s1000_s13 = sshll.u32 %s1669_s23, 6 }
  0x1d   : > { %1183 = vmatpush3.bf16.msra.mxu1 %v1180_v11  ;;  %1153 = vmatprep.subr.bf16.mxu0 %v1152_v19  ;;  %v1188_v29 = vpack.c.bf16 %v660_v28, %v659_v26  ;;  %v532_v33 = vld [vmem:[%s1451_s17 + $0x38] sm:$0xff]  ;;  %v661_v34 = vld [vmem:[%s1456_s20 + $0x30] sm:$0xff]  ;;  %v424_v38 = vmul.f32 %v1497_v31, %v1497_v31  ;;  %v533_v40 = vld [vmem:[%s1451_s17 + $0x40] sm:$0xff]  ;;  %s364_s14 = sadd.s32 %s1000_s13, %s362_s12 }
  0x1e   : > { %1185 = vmatprep.subr.bf16.mxu1 %v1184_v23  ;;  %1155 = vmatpush3.bf16.msra.mxu0 %v1152_v19  ;;  %v1160_v35 = vpack.c.bf16 %v532_v33, %v531_v32  ;;  %v662_v36 = vld [vmem:[%s1456_s20 + $0x38] sm:$0xff]  ;;  %v534_v41 = vld [vmem:[%s1451_s17 + $0x48] sm:$0xff]  ;;  %v663_v42 = vld [vmem:[%s1456_s20 + $0x40] sm:$0xff]  ;;  %s1001_s15 = sshll.u32 %s364_s14, 3 }
  0x1f   : > { %1157 = vmatprep.subr.bf16.mxu0 %v1156_v27  ;;  %v1192_v39 = vpack.c.bf16 %v662_v36, %v661_v34  ;;  %v1164_v43 = vpack.c.bf16 %v534_v41, %v533_v40  ;;  %v664_v44 = vld [vmem:[%s1456_s20 + $0x48] sm:$0xff]  ;;  %v535_v46 = vld [vmem:[%s1451_s17 + $0x50] sm:$0xff]  ;;  %v536_v47 = vld [vmem:[%s1451_s17 + $0x58] sm:$0xff]  ;;  %s1585_s18 = scalar_lea.vmem %s1650_s5, %s1001_s15  ;;  %s1590_s22 = scalar_lea.vmem %s1651_s6, %s1001_s15 }
  0x20   : > { %396 = vadd.xlane.f32.xlu0 %v1466_v10  ;;  %427 = vadd.xlane.f32.xlu1 %v418_v7  ;;  %v1196_v45 = vpack.c.bf16 %v664_v44, %v663_v42  ;;  %v665_v48 = vld [vmem:[%s1456_s20 + $0x50] sm:$0xff]  ;;  %v1168_v49 = vpack.c.bf16 %v536_v47, %v535_v46  ;;  %v666_v50 = vld [vmem:[%s1456_s20 + $0x58] sm:$0xff]  ;;  %v537_v52 = vld [vmem:[%s1451_s17 + $0x60] sm:$0xff] }
  0x21   : > { %1187 = vmatpush3.bf16.msra.mxu1 %v1184_v23  ;;  %v1200_v51 = vpack.c.bf16 %v666_v50, %v665_v48  ;;  %v538_v53 = vld [vmem:[%s1451_s17 + $0x68] sm:$0xff]  ;;  %v667_v54 = vld [vmem:[%s1456_s20 + $0x60] sm:$0xff]  ;;  %v539_v58 = vld [vmem:[%s1451_s17 + $0x70] sm:$0xff] }
  0x22   : > { %1189 = vmatprep.subr.bf16.mxu1 %v1188_v29  ;;  %1159 = vmatpush3.bf16.msra.mxu0 %v1156_v27  ;;  %v1172_v55 = vpack.c.bf16 %v538_v53, %v537_v52  ;;  %v668_v56 = vld [vmem:[%s1456_s20 + $0x68] sm:$0xff]  ;;  %v540_v59 = vld [vmem:[%s1451_s17 + $0x78] sm:$0xff]  ;;  %v669_v60 = vld [vmem:[%s1456_s20 + $0x70] sm:$0xff] }
  0x23   : > { %1161 = vmatprep.subr.bf16.mxu0 %v1160_v35  ;;  %v1204_v57 = vpack.c.bf16 %v668_v56, %v667_v54  ;;  %v1176_v61 = vpack.c.bf16 %v540_v59, %v539_v58  ;;  %v670_v62 = vld [vmem:[%s1456_s20 + $0x78] sm:$0xff]  ;;  %v1545_v48 = vld [vmem:[%s1646_s1] ss:$0 sm:$0xff] }
  0x24   : > { %429 = vadd.xlane.f32.xlu0 %v419_v12  ;;  %431 = vadd.xlane.f32.xlu1 %v420_v13  ;;  %v1208_v63 = vpack.c.bf16 %v670_v62, %v669_v60 }
  0x25   : > { %1191 = vmatpush3.bf16.msra.mxu1 %v1188_v29 }
  0x26   : > { %1193 = vmatprep.subr.bf16.mxu1 %v1192_v39  ;;  %1163 = vmatpush3.bf16.msra.mxu0 %v1160_v35 }
  0x27   : > { %1165 = vmatprep.subr.bf16.mxu0 %v1164_v43 }
  0x28   : > { %400 = vadd.xlane.f32.xlu0 %v1474_v14  ;;  %402 = vadd.xlane.f32.xlu1 %v1477_v15 }
  0x29   : > { %1195 = vmatpush3.bf16.msra.mxu1 %v1192_v39 }
  0x2a   : > { %1197 = vmatprep.subr.bf16.mxu1 %v1196_v45  ;;  %1167 = vmatpush3.bf16.msra.mxu0 %v1164_v43 }
  0x2b   : > { %1169 = vmatprep.subr.bf16.mxu0 %v1168_v49 }
  0x2c   : > { %433 = vadd.xlane.f32.xlu0 %v421_v21  ;;  %435 = vadd.xlane.f32.xlu1 %v422_v22 }
  0x2d   : > { %1199 = vmatpush3.bf16.msra.mxu1 %v1196_v45 }
  0x2e   : > { %1201 = vmatprep.subr.bf16.mxu1 %v1200_v51  ;;  %1171 = vmatpush3.bf16.msra.mxu0 %v1168_v49 }
  0x2f   : > { %1173 = vmatprep.subr.bf16.mxu0 %v1172_v55 }
  0x30   : > { %404 = vadd.xlane.f32.xlu0 %v1494_v30  ;;  %406 = vadd.xlane.f32.xlu1 %v1497_v31 }
  0x31   : > { %1203 = vmatpush3.bf16.msra.mxu1 %v1200_v51 }
  0x32   : > { %1205 = vmatprep.subr.bf16.mxu1 %v1204_v57  ;;  %1175 = vmatpush3.bf16.msra.mxu0 %v1172_v55 }
  0x33   : > { %1177 = vmatprep.subr.bf16.mxu0 %v1176_v61 }
  0x34   : > { %437 = vadd.xlane.f32.xlu0 %v423_v37  ;;  %439 = vadd.xlane.f32.xlu1 %v424_v38 }
  0x35   : > { %1207 = vmatpush3.bf16.msra.mxu1 %v1204_v57 }
  0x36   : > { %1209 = vmatprep.subr.bf16.mxu1 %v1208_v63  ;;  %1179 = vmatpush3.bf16.msra.mxu0 %v1176_v61 }
  0x39   : > { %1211 = vmatpush3.bf16.msra.mxu1 %v1208_v63 }
  0xa5   : > { %v399_v2 = vpop.xlane.xlu1 %398  ;;  %v393_v4 = vpop.xlane.xlu0 %392 }
  0xa6   : > { %v409_v5 = vmul.f32 0.0078125, %v393_v4  ;;  %v1525_v13 = vmul.f32 0.0078125, %v399_v2 }
  0xa8   : > { %v449_v8 = vmul.f32 %v409_v5, %v409_v5  ;;  %v452_v23 = vmul.f32 %v1525_v13, %v1525_v13  ;;  %v465_v41 = vsub.f32 %v1435_v1, %v409_v5  ;;  %v1550_v1 = vld [vmem:[%s1647_s2] ss:$0 sm:$0xff] }
  0xa9   : > { %v395_v6 = vpop.xlane.xlu0 %394  ;;  %v426_v7 = vpop.xlane.xlu1 %425 }
  0xaa   : > { %v410_v9 = vmul.f32 0.0078125, %v395_v6  ;;  %v441_v11 = vmul.f32 0.0078125, %v426_v7  ;;  %v468_v7 = vsub.f32 %v1432_v0, %v1525_v13 }
  0xac   : > { %v457_v12 = vsub.f32 %v441_v11, %v449_v8  ;;  %v450_v18 = vmul.f32 %v410_v9, %v410_v9  ;;  %v466_v52 = vsub.f32 %v1445_v3, %v410_v9 }
  0xad   : > { %v397_v16 = vpop.xlane.xlu0 %396  ;;  %v428_v17 = vpop.xlane.xlu1 %427 }
  0xae   : > { %v473_v19 = vadd.f32 1e-05, %v457_v12  ;;  %v1527_v20 = vmul.f32 0.0078125, %v397_v16  ;;  %v442_v21 = vmul.f32 0.0078125, %v428_v17 }
  0xb0   : > { %1268 = vrsqrt.f32 %v473_v19  ;;  %v458_v22 = vsub.f32 %v442_v21, %v450_v18  ;;  %v451_v26 = vmul.f32 %v1527_v20, %v1527_v20  ;;  %v467_v2 = vsub.f32 %v1466_v10, %v1527_v20 }
  0xb1   : > { %v430_v24 = vpop.xlane.xlu0 %429  ;;  %v432_v25 = vpop.xlane.xlu1 %431 }
  0xb2   : > { %v474_v27 = vadd.f32 1e-05, %v458_v22  ;;  %v443_v28 = vmul.f32 0.0078125, %v430_v24  ;;  %v444_v29 = vmul.f32 0.0078125, %v432_v25 }
  0xb4   : > { %1270 = vrsqrt.f32 %v474_v27  ;;  %v459_v32 = vsub.f32 %v443_v28, %v451_v26  ;;  %v460_v33 = vsub.f32 %v444_v29, %v452_v23 }
  0xb5   : > { %v401_v34 = vpop.xlane.xlu0 %400  ;;  %v403_v35 = vpop.xlane.xlu1 %402 }
  0xb6   : > { %v475_v36 = vadd.f32 1e-05, %v459_v32  ;;  %v476_v37 = vadd.f32 1e-05, %v460_v33  ;;  %v1533_v38 = vmul.f32 0.0078125, %v401_v34  ;;  %v1535_v39 = vmul.f32 0.0078125, %v403_v35 }
  0xb8   : > { %1272 = vrsqrt.f32 %v475_v36  ;;  %v454_v40 = vmul.f32 %v1535_v39, %v1535_v39  ;;  %v453_v45 = vmul.f32 %v1533_v38, %v1533_v38  ;;  %v469_v24 = vsub.f32 %v1474_v14, %v1533_v38 }
  0xb9   : > { %1274 = vrsqrt.f32 %v476_v37  ;;  %v434_v42 = vpop.xlane.xlu0 %433  ;;  %v436_v43 = vpop.xlane.xlu1 %435  ;;  %v470_v26 = vsub.f32 %v1477_v15, %v1535_v39 }
  0xba   : > { %v1269_v44 = vpop.eup %1268  ;;  %v445_v46 = vmul.f32 0.0078125, %v434_v42  ;;  %v446_v47 = vmul.f32 0.0078125, %v436_v43 }
  0xbb   : > { %v489_v49 = vmul.f32 %v1269_v44, %v465_v41 }
  0xbc   : > { %v461_v50 = vsub.f32 %v445_v46, %v453_v45  ;;  %v462_v51 = vsub.f32 %v446_v47, %v454_v40 }
  0xbd   : > { %v405_v53 = vpop.xlane.xlu0 %404  ;;  %v407_v54 = vpop.xlane.xlu1 %406  ;;  %v503_v55 = vmul.f32 %v1545_v48, %v489_v49 }
  0xbe   : > { %v1271_v56 = vpop.eup %1270  ;;  %v477_v57 = vadd.f32 1e-05, %v461_v50  ;;  %v478_v58 = vadd.f32 1e-05, %v462_v51  ;;  %v415_v59 = vmul.f32 0.0078125, %v405_v53  ;;  %v416_v60 = vmul.f32 0.0078125, %v407_v54 }
  0xbf   : > { %v517_v61 = vadd.f32 %v1550_v1, %v503_v55  ;;  %v490_v62 = vmul.f32 %v1271_v56, %v466_v52 }
  0xc0   : > { %1276 = vrsqrt.f32 %v477_v57  ;;  %v456_v63 = vmul.f32 %v416_v60, %v416_v60  ;;  %v455_v8 = vmul.f32 %v415_v59, %v415_v59  ;;  %v471_v35 = vsub.f32 %v1494_v30, %v415_v59 }
  0xc1   : > { %1278 = vrsqrt.f32 %v478_v58  ;;  %v438_v4 = vpop.xlane.xlu0 %437  ;;  %1092 = vmatprep.mubr.f32.mxu0 %v517_v61  ;;  %1136 = vmatprep.mubr.f32.mxu1 %v517_v61  ;;  %v440_v3 = vpop.xlane.xlu1 %439  ;;  %v504_v5 = vmul.f32 %v1545_v48, %v490_v62  ;;  %v472_v15 = vsub.f32 %v1497_v31, %v416_v60 }
  0xc2   : > { %v1273_v6 = vpop.eup %1272  ;;  %v447_v9 = vmul.f32 0.0078125, %v438_v4  ;;  %v448_v11 = vmul.f32 0.0078125, %v440_v3 }
  0xc3   : > { %v1275_v12 = vpop.eup %1274  ;;  %v518_v16 = vadd.f32 %v1550_v1, %v504_v5  ;;  %v491_v17 = vmul.f32 %v1273_v6, %v467_v2 }
  0xc4   : > { %v463_v18 = vsub.f32 %v447_v9, %v455_v8  ;;  %v464_v10 = vsub.f32 %v448_v11, %v456_v63  ;;  %v492_v19 = vmul.f32 %v1275_v12, %v468_v7 }
  0xc5   : > { %1093 = vmatmul.mubr.f32.vlgmr.msra.gmra.mrb[0].mxu0 %v518_v16  ;;  %1137 = vmatmul.mubr.f32.vlgmr.msra.gmra.mrb[0].mxu1 %v518_v16  ;;  %v505_v20 = vmul.f32 %v1545_v48, %v491_v17 }
  0xc6   : > { %v479_v21 = vadd.f32 1e-05, %v463_v18  ;;  %v480_v22 = vadd.f32 1e-05, %v464_v10  ;;  %v506_v23 = vmul.f32 %v1545_v48, %v492_v19 }
  0xc7   : > { %v519_v0 = vadd.f32 %v1550_v1, %v505_v20 }
  0xc8   : > { %1280 = vrsqrt.f32 %v479_v21  ;;  %v520_v13 = vadd.f32 %v1550_v1, %v506_v23 }
  0xc9   : > { %1282 = vrsqrt.f32 %v480_v22  ;;  %1095 = vmatprep.mubr.f32.mxu0 %v519_v0  ;;  %1139 = vmatprep.mubr.f32.mxu1 %v519_v0 }
  0xca   : > { %v1277_v25 = vpop.eup %1276  ;;  %1096 = vmatmul.mubr.f32.gmra.mrb[2].mxu0 %v520_v13  ;;  %1140 = vmatmul.mubr.f32.gmra.mrb[2].mxu1 %v520_v13 }
  0xcb   : > { %v1279_v27 = vpop.eup %1278  ;;  %v493_v28 = vmul.f32 %v1277_v25, %v469_v24 }
  0xcc   : > { %v494_v29 = vmul.f32 %v1279_v27, %v470_v26 }
  0xcd   : > { %v507_v32 = vmul.f32 %v1545_v48, %v493_v28 }
  0xce   : > { %v508_v33 = vmul.f32 %v1545_v48, %v494_v29 }
  0xcf   : > { %v521_v34 = vadd.f32 %v1550_v1, %v507_v32 }
  0xd0   : > { %v522_v14 = vadd.f32 %v1550_v1, %v508_v33 }
  0xd1   : > { %1098 = vmatprep.mubr.f32.mxu0 %v521_v34  ;;  %1142 = vmatprep.mubr.f32.mxu1 %v521_v34 }
  0xd2   : > { %v1281_v36 = vpop.eup %1280  ;;  %1099 = vmatmul.mubr.f32.gmra.mrb[4].mxu0 %v522_v14  ;;  %1143 = vmatmul.mubr.f32.gmra.mrb[4].mxu1 %v522_v14 }
  0xd3   : > { %v1283_v37 = vpop.eup %1282  ;;  %v495_v38 = vmul.f32 %v1281_v36, %v471_v35 }
  0xd4   : > { %v496_v39 = vmul.f32 %v1283_v37, %v472_v15 }
  0xd5   : > { %v509_v40 = vmul.f32 %v1545_v48, %v495_v38 }
  0xd6   : > { %v510_v41 = vmul.f32 %v1545_v48, %v496_v39 }
  0xd7   : > { %v523_v42 = vadd.f32 %v1550_v1, %v509_v40 }
  0xd8   : > { %v524_v30 = vadd.f32 %v1550_v1, %v510_v41 }
  0xd9   : > { %1101 = vmatprep.mubr.f32.mxu0 %v523_v42  ;;  %1145 = vmatprep.mubr.f32.mxu1 %v523_v42 }
  0xda   : > { %1102 = vmatmul.mubr.f32.gmra.mrb[6].mxu0 %v524_v30  ;;  %1146 = vmatmul.mubr.f32.gmra.mrb[6].mxu1 %v524_v30 }
 0x198   : > { %v1094_v31 = vpop.f32.mrb[0].mxu0  ;;  %v1138_v43 = vpop.f32.mrb[0].mxu1 }
 0x199   : > { %648 = vst.msk [vmem:[%s1585_s18 + $0x8] sm:$0xff] %vm646_vm0, %v1094_v31  ;;  %777 = vst.msk [vmem:[%s1590_s22 + $0x8] sm:$0xff] %vm646_vm0, %v1138_v43  ;;  %v607_v44 = vpop.f32.mrb[1].mxu0  ;;  %v737_v45 = vpop.f32.mrb[1].mxu1 }
 0x19a   : > { %647 = vst.msk [vmem:[%s1585_s18] sm:$0xff] %vm646_vm0, %v607_v44  ;;  %776 = vst.msk [vmem:[%s1590_s22] sm:$0xff] %vm646_vm0, %v737_v45 }
 0x19d   : > { %v1097_v46 = vpop.f32.mrb[2].mxu0  ;;  %v1141_v47 = vpop.f32.mrb[2].mxu1 }
 0x19e   : > { %650 = vst.msk [vmem:[%s1585_s18 + $0x18] sm:$0xff] %vm646_vm0, %v1097_v46  ;;  %779 = vst.msk [vmem:[%s1590_s22 + $0x18] sm:$0xff] %vm646_vm0, %v1141_v47  ;;  %v617_v48 = vpop.f32.mrb[3].mxu0  ;;  %v747_v49 = vpop.f32.mrb[3].mxu1 }
 0x19f   : > { %649 = vst.msk [vmem:[%s1585_s18 + $0x10] sm:$0xff] %vm646_vm0, %v617_v48  ;;  %778 = vst.msk [vmem:[%s1590_s22 + $0x10] sm:$0xff] %vm646_vm0, %v747_v49 }
 0x1a5   : > { %v1100_v50 = vpop.f32.mrb[4].mxu0  ;;  %v1144_v51 = vpop.f32.mrb[4].mxu1 }
 0x1a6   : > { %652 = vst.msk [vmem:[%s1585_s18 + $0x28] sm:$0xff] %vm646_vm0, %v1100_v50  ;;  %781 = vst.msk [vmem:[%s1590_s22 + $0x28] sm:$0xff] %vm646_vm0, %v1144_v51  ;;  %v627_v1 = vpop.f32.mrb[5].mxu0  ;;  %v757_v52 = vpop.f32.mrb[5].mxu1 }
 0x1a7   : > { %651 = vst.msk [vmem:[%s1585_s18 + $0x20] sm:$0xff] %vm646_vm0, %v627_v1  ;;  %780 = vst.msk [vmem:[%s1590_s22 + $0x20] sm:$0xff] %vm646_vm0, %v757_v52 }
 0x1ad   : > { %v1103_v53 = vpop.f32.mrb[6].mxu0  ;;  %v1147_v54 = vpop.f32.mrb[6].mxu1 }
 0x1ae   : > { %654 = vst.msk [vmem:[%s1585_s18 + $0x38] sm:$0xff] %vm646_vm0, %v1103_v53  ;;  %783 = vst.msk [vmem:[%s1590_s22 + $0x38] sm:$0xff] %vm646_vm0, %v1147_v54  ;;  %v637_v55 = vpop.f32.mrb[7].mxu0  ;;  %v767_v56 = vpop.f32.mrb[7].mxu1 }
 0x1af   : > { %653 = vst.msk [vmem:[%s1585_s18 + $0x30] sm:$0xff] %vm646_vm0, %v637_v55  ;;  %782 = vst.msk [vmem:[%s1590_s22 + $0x30] sm:$0xff] %vm646_vm0, %v767_v56 }
 0x1b0 PF: > { %s17_s27 = sadd.s32 1, %s1338_s27   ;;  %s1652_s21 = smov %s1326_s24 }
 0x1b1   : > { %p14_p9 = scmp.ge.s32.totalorder %s17_s27, 18   ;;  %s1653_s22 = smov %s1330_s25 }
 0x1b2   : > { %s1654_s23 = smov %s1334_s26  ;;  %s1655_s24 = smov %s1659_s28 }
 0x1b3   : > { %s1656_s25 = smov %s1663_s29  ;;  %s1657_s26 = smov %s1667_s30 }
 0x1b4   :  { %16 = sbr.rel (!%p14_p9) target bundleno = 4 (0x4), region = 88 }

</bundles_post_ra>
